<compile_context>
chip_gen: v5e
topology: v5e:2x2
jax: 0.10.0
libtpu: 0.0.40
codegen_flags: <defaults>
</compile_context>

<pallas_src>
from functools import partial

import jax
import jax.numpy as jnp
from jax.experimental import pallas as pl
from jax.experimental.pallas import tpu as pltpu

_LANES = 128                       # vreg lane width (last dim of the slab)
_MIN_GRID_STEPS = 4                # keep both v7x TCs fed + pipelined writeback
_SMALL_N_THRESHOLD = 2 * 1024 * 1024   # rows; below this jnp.full wins outright


def _round_up(x, m):
    return ((x + m - 1) // m) * m


def _max_tile_rows():
    """Per-generation cap on output-block rows (rows * 512 B per block)."""
    try:
        kind = jax.devices()[0].device_kind.lower()
    except Exception:
        kind = ""
    if "tpu7" in kind or "v7" in kind:
        return 16384   # 8 MiB blocks: ~3.2 TB/s HBM, step overhead -> ~10%
    if "v5" in kind and ("lite" in kind or "5e" in kind):
        return 8192    # 4 MiB blocks: 2x double-buffered fits 16 MiB scoped VMEM
    return 8192        # v6e / default: 4 MiB blocks (~90%+ of writeback roofline)


def _fill_kernel(s_ref, o_ref):
    # s_ref: (1,) precomputed exp(10 * variance) scalar in SMEM
    # o_ref: (tile_rows, 128) lane-dense output tile in VMEM -> unmasked vst
    o_ref[...] = jnp.full(o_ref.shape, s_ref[0], dtype=o_ref.dtype)


@partial(jax.jit, static_argnums=(1,))
def _pallas_fill(s, n):
    """Fill an (n, 1) f32 array with scalar s via a lane-dense Pallas kernel."""
    # Pad only to the (8, 128) layout tile: padding-only writes are < 4 KiB.
    rows = _round_up(pl.cdiv(n, _LANES), 8)
    # Big blocks (per-generation cap), but keep >= _MIN_GRID_STEPS grid steps.
    tile_rows = min(_max_tile_rows(),
                    _round_up(pl.cdiv(rows, _MIN_GRID_STEPS), 8))
    tile_rows = max(tile_rows, 8)
    num_tiles = pl.cdiv(rows, tile_rows)
    out_bytes = rows * _LANES * 4

    padded = pl.pallas_call(
        _fill_kernel,
        out_shape=jax.ShapeDtypeStruct((rows, _LANES), jnp.float32),
        grid=(num_tiles,),
        in_specs=[pl.BlockSpec(memory_space=pltpu.SMEM)],
        out_specs=pl.BlockSpec((tile_rows, _LANES), lambda i: (i, 0)),
        compiler_params=pltpu.CompilerParams(
            dimension_semantics=("parallel",)),
        cost_estimate=pl.CostEstimate(
            flops=0, transcendentals=0, bytes_accessed=out_bytes),
    )(s.reshape(1))

    flat = padded.reshape(-1)          # contiguous -> free reshape
    if rows * _LANES == n:
        return flat.reshape(n, 1)      # exact fit: no slice copy at all
    return flat[:n].reshape(n, 1)      # tail padding < 1024 elems; fuses under jit


def single_variance_forward(x, variance, *, small_n_threshold=_SMALL_N_THRESHOLD):
    """x: (N, ...) array (values unused); variance: scalar float32 parameter.

    Returns (N, 1) float32 filled with exp(10 * variance).
    """
    n = x.shape[0]
    s = jnp.exp(jnp.asarray(variance, dtype=jnp.float32) * 10.0)

    # Small/medium batches: a scalar broadcast writes exactly 4N bytes with no
    # kernel launch and fuses into consumers — strictly faster than any kernel.
    if n <= small_n_threshold:
        return jnp.full((n, 1), s, dtype=jnp.float32)

    return _pallas_fill(s, n)


if __name__ == "__main__":
    key = jax.random.PRNGKey(0)

    # Deterministic parameter init (matches nn.Parameter(torch.tensor(init_val))).
    init_val = 0.3
    variance = jnp.float32(init_val)

    # Small NeuS-style batch of 3-D points: takes the fused jnp.full fast path.
    x_small = jax.random.normal(key, (8, 3), dtype=jnp.float32)
    out_small = jax.block_until_ready(single_variance_forward(x_small, variance))

    # Modest batch with the threshold overridden to force the Pallas kernel
    # path, so the kernel itself is compiled and run on TPU in this demo.
    x_big = jax.random.normal(key, (2500, 3), dtype=jnp.float32)
    out_big = jax.block_until_ready(
        single_variance_forward(x_big, variance, small_n_threshold=0))

    expected_val = jnp.exp(variance * 10.0)
    for x, out in ((x_small, out_small), (x_big, out_big)):
        expected = jnp.ones((x.shape[0], 1), dtype=jnp.float32) * expected_val
        assert out.shape == (x.shape[0], 1)
        assert out.dtype == jnp.float32
        assert bool(jnp.allclose(out, expected, rtol=1e-6, atol=1e-6))

    print("KERNEL_OK")
</pallas_src>

<mosaic_0001>
module attributes {stable_mosaic.version = 11 : i64} {
  func.func @_fill_kernel(%arg0: i32, %arg1: memref<1xf32, #tpu.memory_space<smem>>, %arg2: memref<8x128xf32, #tpu.memory_space<vmem>>) attributes {dimension_semantics = [#tpu.dimension_semantics<parallel>], iteration_bounds = array<i64: 3>, scalar_prefetch = 0 : i64, scratch_operands = 0 : i64, tpu.core_type = #tpu.core_type<tc>, window_params = [{transform_indices = @transform_0, window_bounds = array<i64: 1>}, {transform_indices = @transform_1, window_bounds = array<i64: 8, 128>}]} {
    %c0 = arith.constant 0 : index
    %0 = memref.load %arg1[%c0] : memref<1xf32, #tpu.memory_space<smem>>
    %1 = vector.broadcast %0 : f32 to vector<8x128xf32>
    %c0_0 = arith.constant 0 : index
    %c0_1 = arith.constant 0 : index
    %2 = vector.load %arg2[%c0_0, %c0_1] : memref<8x128xf32, #tpu.memory_space<vmem>>, vector<8x128xf32>
    tpu.vector_store %arg2[%c0_0, %c0_1], %1 {strides = array<i32>} : memref<8x128xf32, #tpu.memory_space<vmem>>, vector<8x128xf32>,
    return
  }
  func.func @transform_0(%arg0: i32) -> i32 {
    %c0_i32 = arith.constant 0 : i32
    %c0_i32_0 = arith.constant 0 : i32
    return %c0_i32 : i32
  }
  func.func @transform_1(%arg0: i32) -> (i32, i32) {
    %c0_i32 = arith.constant 0 : i32
    %c0_i32_0 = arith.constant 0 : i32
    return %arg0, %c0_i32 : i32, i32
  }
}

</mosaic_0001>

<bundles_post_ra>
// kernel: _pallas_fill.1
= control target key start
LH: loop header
LB: loop body
LE: loop exit
PB: predicated region body
PF: predicated region fallthrough
CT: control target
= control target key end

     0   :  { %s159_s8 = smov 0   ;;  %s179_s0 = inlined_call_operand.<no memory space> [shape: f32[1], index: 0, kind: input, shape index: {}]   ;;  %s180_s1 = inlined_call_operand.vmem [shape: f32[24,128], index: 1, kind: output, shape index: {}]  }
   0x1   :  { %6 = sst [smem:[#allocation2]] %s179_s0 }
   0x2 LB: > { %s140_s9 = sadd.s32 4294967295, %s161_s8   ;;  %p143_p0 = scmp.ge.s32.totalorder %s161_s8, 1  ;;  %s161_s8 = sphi %s159_s8, %s12_s8  }
   0x3   : > { %p78_p1 = scmp.lt.s32.totalorder %s161_s8, 4 }
   0x5   : > { %p79_p2 = pnand %p143_p0, %p78_p1 }
   0x6   : > { %p92_p3 = scmp.lt.s32.totalorder (!%p79_p2), %s140_s9, 2  ;;  %s96_s10 = sld [smem:[#allocation2]] (!%p79_p2) }
   0x7   : > { %82 = sbr.rel (%p79_p2) target bundleno = 16 (0x10), region = 24 }
   0xc   : > { %s182_s9 = smov (!%p92_p3, %s140_s9), 2  ;;  %v97_v0 = vstv %s96_s10 }
   0xd   : > { %s144_s11 = sshll.u32 %s182_s9, 3 }
   0xe   : > { %s95_s14 = scalar_lea.vmem %s180_s1, %s144_s11 }
   0xf   : > { %98 = vst [vmem:[%s95_s14] sm:$0xff] %v97_v0 }
  0x10 PF: > { %s12_s8 = sadd.s32 1, %s161_s8  }
  0x11   : > { %p9_p4 = scmp.ge.s32.totalorder %s12_s8, 5  }
  0x13   :  { %11 = sbr.rel (!%p9_p4) target bundleno = 2 (0x2), region = 51 }

</bundles_post_ra>
